<compile_context>
chip_gen: v6e
topology: v6e:2x2x1
jax: 0.10.0
libtpu: 0.0.40
codegen_flags: <defaults>
</compile_context>

<pallas_src>
import functools
import math

import jax
import jax.numpy as jnp
from jax.experimental import pallas as pl
from jax.experimental.pallas import tpu as pltpu

_VMEM_LIMIT = 48 * 1024 * 1024  # explicit scoped-VMEM limit (fits v7x 64 MiB physical)


# ----------------------------------------------------------------------------
# In-kernel helpers (traced jnp code shared by the fused kernels)
# ----------------------------------------------------------------------------
def _ln(x, g, b, eps):
    """LayerNorm over the last dim; x:(M,D) fp32, g/b:(1,D)."""
    mu = jnp.mean(x, axis=-1, keepdims=True)
    xc = x - mu
    var = jnp.mean(xc * xc, axis=-1, keepdims=True)
    return xc * jax.lax.rsqrt(var + eps) * g + b


def _dot_t(a, b):
    """a:(M,D) @ b:(N,D)^T -> (M,N); contract last dims, no explicit transpose."""
    return jax.lax.dot_general(a, b, (((1,), (1,)), ((), ())),
                               preferred_element_type=jnp.float32)


def _mha_core(q, k, v, wo, bo, n_head, dh_pad, mask=None):
    """Multi-head attention (scale folded into q) + single fused output projection.

    q:(Lq,Dp) k,v:(Lk,Dp) fp32 where Dp = n_head*dh_pad and each head occupies a
    128-aligned lane block (padding lanes are zero so the math is exact).
    wo:(Dp,D) bf16 (zero rows for padding), bo:(1,D) fp32.
    mask: optional additive (1,Lk) fp32 mask (-1e9 for masked keys).
    """
    heads = []
    for h in range(n_head):
        sl = slice(h * dh_pad, (h + 1) * dh_pad)
        s = _dot_t(q[:, sl], k[:, sl])                              # (Lq, Lk) fp32
        if mask is not None:
            s = s + mask
        s = s - jnp.max(s, axis=-1, keepdims=True)
        p = jnp.exp(s)
        p = p * pl.reciprocal(jnp.sum(p, axis=-1, keepdims=True), approx=True)
        heads.append(jnp.dot(p, v[:, sl], preferred_element_type=jnp.float32))
    o = jnp.concatenate(heads, axis=-1)                             # (Lq, Dp) fp32
    return jnp.dot(o.astype(jnp.bfloat16), wo,
                   preferred_element_type=jnp.float32) + bo         # (Lq, D)


# ----------------------------------------------------------------------------
# Pallas kernels
# ----------------------------------------------------------------------------
def _inproj_kernel(x_ref, w1_ref, b1_ref, w2_ref, b2_ref, o_ref):
    # conv1x1 + BN(folded) + ReLU + conv1x1 + BN(folded), fused, row-tiled.
    x = x_ref[...]
    h = jnp.dot(x.astype(jnp.bfloat16), w1_ref[...],
                preferred_element_type=jnp.float32) + b1_ref[...]
    h = jnp.maximum(h, 0.0)
    h = jnp.dot(h.astype(jnp.bfloat16), w2_ref[...],
                preferred_element_type=jnp.float32) + b2_ref[...]
    o_ref[...] = h.astype(o_ref.dtype)


def _encoder_stack_kernel(x_ref, wqkv_ref, bqkv_ref, wo_ref, bo_ref,
                          g1_ref, be1_ref,
                          wff1_ref, bff1_ref, wff2_ref, bff2_ref,
                          g2_ref, be2_ref, gf_ref, bf_ref,
                          y_ref, act_ref, *, n_head, dh_pad, eps):
    """One grid point = (batch element i, layer l).  Activation is carried across the
    layer axis in the fp32 VMEM scratch act_ref; the encoder final norm is applied at
    the last layer and the result is written (bf16) to y_ref."""
    l = pl.program_id(1)
    dp = n_head * dh_pad

    @pl.when(l == 0)
    def _():
        act_ref[...] = x_ref[0]

    x = act_ref[...]                                                # (T, D) fp32
    qkv = jnp.dot(x.astype(jnp.bfloat16), wqkv_ref[0],
                  preferred_element_type=jnp.float32) + bqkv_ref[0]
    attn = _mha_core(qkv[:, :dp], qkv[:, dp:2 * dp], qkv[:, 2 * dp:],
                     wo_ref[0], bo_ref[0], n_head, dh_pad)
    x = _ln(x + attn, g1_ref[0], be1_ref[0], eps)
    h = jnp.maximum(jnp.dot(x.astype(jnp.bfloat16), wff1_ref[0],
                            preferred_element_type=jnp.float32) + bff1_ref[0], 0.0)
    h = jnp.dot(h.astype(jnp.bfloat16), wff2_ref[0],
                preferred_element_type=jnp.float32) + bff2_ref[0]
    x = _ln(x + h, g2_ref[0], be2_ref[0], eps)
    act_ref[...] = x

    @pl.when(l == pl.num_programs(1) - 1)
    def _():
        y_ref[0] = _ln(x, gf_ref[...], bf_ref[...], eps).astype(y_ref.dtype)


def _decoder_stack_kernel(tgt_ref, mem_ref, qmask_ref,
                          s_wqkv_ref, s_bqkv_ref, s_wo_ref, s_bo_ref, g1_ref, be1_ref,
                          c_wq_ref, c_bq_ref, c_wkv_ref, c_bkv_ref, c_wo_ref, c_bo_ref,
                          g2_ref, be2_ref,
                          wff1_ref, bff1_ref, wff2_ref, bff2_ref, g3_ref, be3_ref,
                          gf_ref, bf_ref,
                          y_ref, act_ref, *, n_head, dh_pad, eps):
    l = pl.program_id(1)
    dp = n_head * dh_pad

    @pl.when(l == 0)
    def _():
        act_ref[...] = tgt_ref[0]

    tq = act_ref[...]                                               # (Nq, D) fp32

    # self-attention on learned queries (padded queries masked out of the keys)
    qkv = jnp.dot(tq.astype(jnp.bfloat16), s_wqkv_ref[0],
                  preferred_element_type=jnp.float32) + s_bqkv_ref[0]
    attn = _mha_core(qkv[:, :dp], qkv[:, dp:2 * dp], qkv[:, 2 * dp:],
                     s_wo_ref[0], s_bo_ref[0], n_head, dh_pad, mask=qmask_ref[...])
    tq = _ln(tq + attn, g1_ref[0], be1_ref[0], eps)

    # cross-attention: queries attend to encoder memory (bf16 resident in VMEM)
    mem = mem_ref[0]                                                # (T, D) bf16
    q = jnp.dot(tq.astype(jnp.bfloat16), c_wq_ref[0],
                preferred_element_type=jnp.float32) + c_bq_ref[0]
    kv = jnp.dot(mem, c_wkv_ref[0],
                 preferred_element_type=jnp.float32) + c_bkv_ref[0]
    attn = _mha_core(q, kv[:, :dp], kv[:, dp:], c_wo_ref[0], c_bo_ref[0],
                     n_head, dh_pad)
    tq = _ln(tq + attn, g2_ref[0], be2_ref[0], eps)

    # FFN
    h = jnp.maximum(jnp.dot(tq.astype(jnp.bfloat16), wff1_ref[0],
                            preferred_element_type=jnp.float32) + bff1_ref[0], 0.0)
    h = jnp.dot(h.astype(jnp.bfloat16), wff2_ref[0],
                preferred_element_type=jnp.float32) + bff2_ref[0]
    tq = _ln(tq + h, g3_ref[0], be3_ref[0], eps)
    act_ref[...] = tq

    @pl.when(l == pl.num_programs(1) - 1)
    def _():
        y_ref[0] = _ln(tq, gf_ref[...], bf_ref[...], eps).astype(y_ref.dtype)


def _clip_head_kernel(q_ref, pe_ref, ne_ref, pw_ref, nw_ref, base_ref, smat_ref,
                      out_ref, goe_ref, cpos_ref, cneg_ref,
                      *, rescaling, rescale_seven, eps):
    # CLIPClassifer: cosine sims vs pos/neg rubric embeddings, weighted sum, sigmoid
    # rescale, sum over queries + sum(base_values).  All fp32.
    q = q_ref[...]                                                  # (M, D)
    qn = q * jax.lax.rsqrt(jnp.sum(q * q, axis=-1, keepdims=True) + eps)
    pe = pe_ref[...]
    pen = pe * jax.lax.rsqrt(jnp.sum(pe * pe, axis=-1, keepdims=True) + eps)
    ne = ne_ref[...]
    nen = ne * jax.lax.rsqrt(jnp.sum(ne * ne, axis=-1, keepdims=True) + eps)
    cpos = _dot_t(qn, pen)                                          # (M, n_pos)
    cneg = _dot_t(qn, nen)                                          # (M, n_neg)
    goe = (jnp.sum(cpos * pw_ref[...], axis=-1, keepdims=True) +
           jnp.sum(cneg * nw_ref[...], axis=-1, keepdims=True))     # (M, 1)
    if rescaling:
        sig = 1.0 / (1.0 + jnp.exp(-goe))
        if rescale_seven:
            goe = -3.0 + sig * 6.0
        else:
            goe = -5.0 + sig * 10.0
    # per-batch sum of goe via tiny summing matmul (smat:(B,M)) + sum(base_values)
    out = (jnp.dot(smat_ref[...], goe, preferred_element_type=jnp.float32) +
           jnp.sum(base_ref[...], axis=-1, keepdims=True))          # (B, 1)
    out_ref[...] = out.astype(out_ref.dtype)
    goe_ref[...] = goe.astype(goe_ref.dtype)
    cpos_ref[...] = cpos.astype(cpos_ref.dtype)
    cneg_ref[...] = cneg.astype(cneg_ref.dtype)


# ----------------------------------------------------------------------------
# BlockSpec helpers
# ----------------------------------------------------------------------------
def _full1(shape):
    """Whole-array block, constant index, for 1-D grids."""
    n = len(shape)
    return pl.BlockSpec(tuple(shape), lambda i, _n=n: (0,) * _n)


def _lspec(trailing):
    """Per-layer block: stacked array (L, *trailing), block index follows layer axis."""
    n = len(trailing)
    return pl.BlockSpec((1,) + tuple(trailing),
                        lambda i, l, _n=n: (l,) + (0,) * _n)


def _cspec(shape):
    """Whole-array block, constant index, for the (batch, layer) grids."""
    n = len(shape)
    return pl.BlockSpec(tuple(shape), lambda i, l, _n=n: (0,) * _n)


# ----------------------------------------------------------------------------
# pallas_call wrappers
# ----------------------------------------------------------------------------
def in_projection(x_flat, w1, b1, w2, b2):
    M, cin = x_flat.shape
    cmid = w1.shape[1]
    d = w2.shape[1]
    tile_m = 256 if M >= 256 else M
    return pl.pallas_call(
        _inproj_kernel,
        grid=(pl.cdiv(M, tile_m),),
        out_shape=jax.ShapeDtypeStruct((M, d), jnp.float32),
        in_specs=[
            pl.BlockSpec((tile_m, cin), lambda i: (i, 0)),
            _full1((cin, cmid)), _full1((1, cmid)),
            _full1((cmid, d)), _full1((1, d)),
        ],
        out_specs=pl.BlockSpec((tile_m, d), lambda i: (i, 0)),
        compiler_params=pltpu.CompilerParams(
            dimension_semantics=("parallel",),
            vmem_limit_bytes=_VMEM_LIMIT),
    )(x_flat, w1, b1, w2, b2)


def encoder_stack(x, ep, norm_g, norm_b, *, n_head, dh_pad):
    b, t, d = x.shape
    n_layers = ep["w_qkv"].shape[0]
    dp = n_head * dh_pad
    f = ep["w_ff1"].shape[-1]
    kernel = functools.partial(_encoder_stack_kernel,
                               n_head=n_head, dh_pad=dh_pad, eps=1e-5)
    return pl.pallas_call(
        kernel,
        grid=(b, n_layers),
        out_shape=jax.ShapeDtypeStruct((b, t, d), jnp.bfloat16),
        in_specs=[
            pl.BlockSpec((1, t, d), lambda i, l: (i, 0, 0)),
            _lspec((d, 3 * dp)), _lspec((1, 3 * dp)),
            _lspec((dp, d)), _lspec((1, d)),
            _lspec((1, d)), _lspec((1, d)),
            _lspec((d, f)), _lspec((1, f)),
            _lspec((f, d)), _lspec((1, d)),
            _lspec((1, d)), _lspec((1, d)),
            _cspec((1, d)), _cspec((1, d)),
        ],
        out_specs=pl.BlockSpec((1, t, d), lambda i, l: (i, 0, 0)),
        scratch_shapes=[pltpu.VMEM((t, d), jnp.float32)],
        compiler_params=pltpu.CompilerParams(
            dimension_semantics=("parallel", "arbitrary"),
            vmem_limit_bytes=_VMEM_LIMIT),
    )(x,
      ep["w_qkv"], ep["b_qkv"], ep["w_o"], ep["b_o"],
      ep["g1"], ep["be1"],
      ep["w_ff1"], ep["b_ff1"], ep["w_ff2"], ep["b_ff2"],
      ep["g2"], ep["be2"],
      norm_g, norm_b)


def decoder_stack(tgt0, mem, qmask, dpar, norm_g, norm_b, *, n_head, dh_pad):
    b, nq, d = tgt0.shape
    t = mem.shape[1]
    n_layers = dpar["s_w_qkv"].shape[0]
    dp = n_head * dh_pad
    f = dpar["w_ff1"].shape[-1]
    kernel = functools.partial(_decoder_stack_kernel,
                               n_head=n_head, dh_pad=dh_pad, eps=1e-5)
    return pl.pallas_call(
        kernel,
        grid=(b, n_layers),
        out_shape=jax.ShapeDtypeStruct((b, nq, d), jnp.float32),
        in_specs=[
            pl.BlockSpec((1, nq, d), lambda i, l: (i, 0, 0)),
            pl.BlockSpec((1, t, d), lambda i, l: (i, 0, 0)),
            _cspec((1, nq)),
            _lspec((d, 3 * dp)), _lspec((1, 3 * dp)),
            _lspec((dp, d)), _lspec((1, d)),
            _lspec((1, d)), _lspec((1, d)),
            _lspec((d, dp)), _lspec((1, dp)),
            _lspec((d, 2 * dp)), _lspec((1, 2 * dp)),
            _lspec((dp, d)), _lspec((1, d)),
            _lspec((1, d)), _lspec((1, d)),
            _lspec((d, f)), _lspec((1, f)),
            _lspec((f, d)), _lspec((1, d)),
            _lspec((1, d)), _lspec((1, d)),
            _cspec((1, d)), _cspec((1, d)),
        ],
        out_specs=pl.BlockSpec((1, nq, d), lambda i, l: (i, 0, 0)),
        scratch_shapes=[pltpu.VMEM((nq, d), jnp.float32)],
        compiler_params=pltpu.CompilerParams(
            dimension_semantics=("parallel", "arbitrary"),
            vmem_limit_bytes=_VMEM_LIMIT),
    )(tgt0, mem, qmask,
      dpar["s_w_qkv"], dpar["s_b_qkv"], dpar["s_w_o"], dpar["s_b_o"],
      dpar["g1"], dpar["be1"],
      dpar["c_w_q"], dpar["c_b_q"], dpar["c_w_kv"], dpar["c_b_kv"],
      dpar["c_w_o"], dpar["c_b_o"],
      dpar["g2"], dpar["be2"],
      dpar["w_ff1"], dpar["b_ff1"], dpar["w_ff2"], dpar["b_ff2"],
      dpar["g3"], dpar["be3"],
      norm_g, norm_b)


def clip_head(q1, base_values, params, rescaling=True):
    b, nq, d = q1.shape
    n_pos = params["pos_emb"].shape[0]
    n_neg = params["neg_emb"].shape[0]
    M = b * nq
    # (B, M) block-sum matrix: out[b] = sum_q goe[b, q]
    smat = jnp.kron(jnp.eye(b, dtype=jnp.float32), jnp.ones((1, nq), jnp.float32))
    kernel = functools.partial(_clip_head_kernel, rescaling=rescaling,
                               rescale_seven=(nq == 7), eps=1e-12)
    out2, goe_flat, cpos_flat, cneg_flat = pl.pallas_call(
        kernel,
        grid=(1,),
        out_shape=(
            jax.ShapeDtypeStruct((b, 1), jnp.float32),
            jax.ShapeDtypeStruct((M, 1), jnp.float32),
            jax.ShapeDtypeStruct((M, n_pos), jnp.float32),
            jax.ShapeDtypeStruct((M, n_neg), jnp.float32),
        ),
        in_specs=[
            _full1((M, d)),
            _full1((n_pos, d)), _full1((n_neg, d)),
            _full1((1, n_pos)), _full1((1, n_neg)),
            _full1((b, nq)),
            _full1((b, M)),
        ],
        out_specs=(
            _full1((b, 1)),
            _full1((M, 1)),
            _full1((M, n_pos)),
            _full1((M, n_neg)),
        ),
        compiler_params=pltpu.CompilerParams(vmem_limit_bytes=_VMEM_LIMIT),
    )(q1.reshape(M, d), params["pos_emb"], params["neg_emb"],
      params["pos_w"], params["neg_w"], base_values, smat)
    return (out2.reshape(b),
            goe_flat.reshape(b, nq),
            cpos_flat.reshape(b, nq, n_pos),
            cneg_flat.reshape(b, nq, n_neg))


# ----------------------------------------------------------------------------
# Forward pass (default path of CLIP_GDLT_W_Decoder.forward)
# ----------------------------------------------------------------------------
def gdlt_clip_forward(params, cfg, x, base_values, rescaling=True):
    b, t, c = x.shape
    d = cfg["hidden_dim"]
    n_head = cfg["n_head"]
    dh_pad = cfg["dh_pad"]
    nq = cfg["n_query"]
    nq_pad = cfg["nq_pad"]

    # in_proj (conv1x1/BN/ReLU/conv1x1/BN, fused, BN folded, row-tiled)
    mem = in_projection(x.reshape(b * t, c),
                        params["inproj_w1"], params["inproj_b1"],
                        params["inproj_w2"], params["inproj_b2"]).reshape(b, t, d)

    # transformer encoder stack + final norm (single fused pallas_call), bf16 memory out
    mem = encoder_stack(mem, params["enc"], params["enc_norm_g"], params["enc_norm_b"],
                        n_head=n_head, dh_pad=dh_pad)

    # learned segment anchors (padded to nq_pad) -> transformer decoder stack + final norm
    tgt0 = jnp.broadcast_to(params["anchors"][None, :, :], (b, nq_pad, d))
    qmask = jnp.where(jnp.arange(nq_pad) < nq, 0.0, -1e9).astype(jnp.float32)
    qmask = qmask.reshape(1, nq_pad)
    q1_full = decoder_stack(tgt0, mem, qmask, params["dec"],
                            params["dec_norm_g"], params["dec_norm_b"],
                            n_head=n_head, dh_pad=dh_pad)
    q1 = q1_full[:, :nq, :]

    # CLIP classifier head (cosine sims, weighted goe, sigmoid rescale, sum + base)
    out, goe, cpos, cneg = clip_head(q1, base_values, params, rescaling=rescaling)
    return {
        "output": out,
        "goe_predictions": goe,
        "pos_rubric_cos_sims": cpos,
        "neg_rubric_cos_sims": cneg,
        "losses": {},      # l1_norm=False default
        "embed": q1,
        "attns": [],       # need_weights=False default
    }


# ----------------------------------------------------------------------------
# Deterministic synthetic parameters (mirrors module __init__; BN folded, attention
# scale folded into Wq, heads zero-padded to 128-lane blocks, layers stacked)
# ----------------------------------------------------------------------------
def init_params(key, in_dim, hidden_dim, n_head, n_encoder, n_decoder, n_query,
                n_pos, n_neg):
    assert hidden_dim % n_head == 0
    ff_dim = 1 * hidden_dim                    # Transformer(dim_feedforward=1*hidden_dim)
    dh = hidden_dim // n_head
    dh_pad = ((dh + 127) // 128) * 128         # lane-aligned per-head block
    dp = n_head * dh_pad
    scale = 1.0 / math.sqrt(dh)                # folded into the packed Wq
    nq_pad = ((n_query + 7) // 8) * 8
    keys = iter(jax.random.split(key, 4096))

    def mat(shape, s=0.05):
        return s * jax.random.normal(next(keys), shape, jnp.float32)

    def vec(shape, s=0.02):
        return s * jax.random.normal(next(keys), shape, jnp.float32)

    def pack_cols(w, b, scl=1.0):
        # w:(D, D), b:(D,) with head h at cols [h*dh:(h+1)*dh] -> (D, Dp) / (Dp,)
        wp = jnp.zeros((w.shape[0], dp), jnp.float32)
        bp = jnp.zeros((dp,), jnp.float32)
        for h in range(n_head):
            wp = wp.at[:, h * dh_pad:h * dh_pad + dh].set(w[:, h * dh:(h + 1) * dh] * scl)
            bp = bp.at[h * dh_pad:h * dh_pad + dh].set(b[h * dh:(h + 1) * dh] * scl)
        return wp, bp

    def pack_rows(w):
        # w:(D, D) Wo with head h at rows [h*dh:(h+1)*dh] -> (Dp, D), zero pad rows
        wp = jnp.zeros((dp, w.shape[1]), jnp.float32)
        for h in range(n_head):
            wp = wp.at[h * dh_pad:h * dh_pad + dh, :].set(w[h * dh:(h + 1) * dh, :])
        return wp

    d = hidden_dim

    def self_attn():
        wq, wk, wv, wo = mat((d, d)), mat((d, d)), mat((d, d)), mat((d, d))
        bq, bk, bv, bo = vec((d,)), vec((d,)), vec((d,)), vec((d,))
        wqp, bqp = pack_cols(wq, bq, scale)
        wkp, bkp = pack_cols(wk, bk)
        wvp, bvp = pack_cols(wv, bv)
        return {
            "w_qkv": jnp.concatenate([wqp, wkp, wvp], axis=1).astype(jnp.bfloat16),
            "b_qkv": jnp.concatenate([bqp, bkp, bvp]).reshape(1, -1),
            "w_o": pack_rows(wo).astype(jnp.bfloat16),
            "b_o": bo.reshape(1, -1),
        }

    def cross_attn():
        wq, wk, wv, wo = mat((d, d)), mat((d, d)), mat((d, d)), mat((d, d))
        bq, bk, bv, bo = vec((d,)), vec((d,)), vec((d,)), vec((d,))
        wqp, bqp = pack_cols(wq, bq, scale)
        wkp, bkp = pack_cols(wk, bk)
        wvp, bvp = pack_cols(wv, bv)
        return {
            "w_q": wqp.astype(jnp.bfloat16), "b_q": bqp.reshape(1, -1),
            "w_kv": jnp.concatenate([wkp, wvp], axis=1).astype(jnp.bfloat16),
            "b_kv": jnp.concatenate([bkp, bvp]).reshape(1, -1),
            "w_o": pack_rows(wo).astype(jnp.bfloat16),
            "b_o": bo.reshape(1, -1),
        }

    def ffn_p():
        return {"w_ff1": mat((d, ff_dim)).astype(jnp.bfloat16),
                "b_ff1": vec((ff_dim,)).reshape(1, -1),
                "w_ff2": mat((ff_dim, d)).astype(jnp.bfloat16),
                "b_ff2": vec((d,)).reshape(1, -1)}

    def ln_pair():
        return jnp.ones((1, d), jnp.float32), jnp.zeros((1, d), jnp.float32)

    def enc_layer():
        p = dict(self_attn())
        p.update(ffn_p())
        p["g1"], p["be1"] = ln_pair()
        p["g2"], p["be2"] = ln_pair()
        return p

    def dec_layer():
        p = {"s_" + k: v for k, v in self_attn().items()}
        p.update({"c_" + k: v for k, v in cross_attn().items()})
        p.update(ffn_p())
        p["g1"], p["be1"] = ln_pair()
        p["g2"], p["be2"] = ln_pair()
        p["g3"], p["be3"] = ln_pair()
        return p

    def stack(layers):
        return jax.tree_util.tree_map(lambda *xs: jnp.stack(xs), *layers)

    # in_proj: conv1x1 + BatchNorm1d (eval, folded) + ReLU + conv1x1 + BatchNorm1d (folded)
    c_mid = in_dim // 2
    eps = 1e-5
    conv1_w, conv1_b = mat((in_dim, c_mid)), vec((c_mid,))
    bn1_g, bn1_b = 1.0 + vec((c_mid,)), vec((c_mid,))
    bn1_mean, bn1_var = jnp.zeros((c_mid,)), jnp.ones((c_mid,))
    s1 = bn1_g / jnp.sqrt(bn1_var + eps)
    inproj_w1 = (conv1_w * s1[None, :]).astype(jnp.bfloat16)
    inproj_b1 = ((conv1_b - bn1_mean) * s1 + bn1_b).reshape(1, -1)

    conv2_w, conv2_b = mat((c_mid, hidden_dim)), vec((hidden_dim,))
    bn2_g, bn2_b = 1.0 + vec((hidden_dim,)), vec((hidden_dim,))
    bn2_mean, bn2_var = jnp.zeros((hidden_dim,)), jnp.ones((hidden_dim,))
    s2 = bn2_g / jnp.sqrt(bn2_var + eps)
    inproj_w2 = (conv2_w * s2[None, :]).astype(jnp.bfloat16)
    inproj_b2 = ((conv2_b - bn2_mean) * s2 + bn2_b).reshape(1, -1)

    anchors = mat((n_query, hidden_dim), s=0.1)          # segment_anchors.weight
    anchors_pad = jnp.zeros((nq_pad, hidden_dim), jnp.float32).at[:n_query].set(anchors)

    # TODO(synk): the real module torch.load()s a CLIP-classifier checkpoint and builds
    # rubric text embeddings with a CLIP text encoder; synthetic stand-ins are used here.
    params = {
        "inproj_w1": inproj_w1, "inproj_b1": inproj_b1,
        "inproj_w2": inproj_w2, "inproj_b2": inproj_b2,
        "enc": stack([enc_layer() for _ in range(n_encoder)]),
        "enc_norm_g": jnp.ones((1, hidden_dim), jnp.float32),
        "enc_norm_b": jnp.zeros((1, hidden_dim), jnp.float32),
        "dec": stack([dec_layer() for _ in range(n_decoder)]),
        "dec_norm_g": jnp.ones((1, hidden_dim), jnp.float32),
        "dec_norm_b": jnp.zeros((1, hidden_dim), jnp.float32),
        "anchors": anchors_pad,
        "pos_emb": jax.random.normal(next(keys), (n_pos, hidden_dim), jnp.float32),
        "neg_emb": jax.random.normal(next(keys), (n_neg, hidden_dim), jnp.float32),
        "pos_w": vec((n_pos,), s=0.1).reshape(1, -1),
        "neg_w": vec((n_neg,), s=0.1).reshape(1, -1),
    }
    cfg = {"hidden_dim": hidden_dim, "n_head": n_head, "dh_pad": dh_pad,
           "n_query": n_query, "nq_pad": nq_pad}
    return params, cfg


# ----------------------------------------------------------------------------
if __name__ == "__main__":
    # Small test shapes (real module fixes hidden_dim=768; scaled down for the test).
    in_dim, hidden_dim = 64, 128
    n_head, n_encoder, n_decoder, n_query = 4, 2, 2, 8
    n_pos, n_neg = 16, 16
    b, t = 2, 16

    key = jax.random.PRNGKey(0)
    k_param, k_x, k_base = jax.random.split(key, 3)
    params, cfg = init_params(k_param, in_dim, hidden_dim, n_head, n_encoder,
                              n_decoder, n_query, n_pos, n_neg)

    x = jax.random.normal(k_x, (b, t, in_dim), jnp.float32)
    base_values = jax.random.normal(k_base, (b, n_query), jnp.float32)

    out = gdlt_clip_forward(params, cfg, x, base_values, rescaling=True)
    jax.block_until_ready(out["output"])
    jax.block_until_ready(out["embed"])
    jax.block_until_ready(out["goe_predictions"])
    jax.block_until_ready(out["pos_rubric_cos_sims"])
    jax.block_until_ready(out["neg_rubric_cos_sims"])

    assert out["output"].shape == (b,)
    assert out["embed"].shape == (b, n_query, hidden_dim)
    assert out["goe_predictions"].shape == (b, n_query)
    assert out["pos_rubric_cos_sims"].shape == (b, n_query, n_pos)
    assert out["neg_rubric_cos_sims"].shape == (b, n_query, n_neg)
    assert bool(jnp.all(jnp.isfinite(out["output"])))
    print("KERNEL_OK")
</pallas_src>

<mosaic_0001>
module attributes {stable_mosaic.version = 11 : i64} {
  func.func @_inproj_kernel(%arg0: i32, %arg1: memref<32x64xf32, #tpu.memory_space<vmem>>, %arg2: memref<64x32xbf16, #tpu.memory_space<vmem>>, %arg3: memref<1x32xf32, #tpu.memory_space<vmem>>, %arg4: memref<32x128xbf16, #tpu.memory_space<vmem>>, %arg5: memref<1x128xf32, #tpu.memory_space<vmem>>, %arg6: memref<32x128xf32, #tpu.memory_space<vmem>>) attributes {dimension_semantics = [#tpu.dimension_semantics<parallel>], iteration_bounds = array<i64: 1>, scalar_prefetch = 0 : i64, scratch_operands = 0 : i64, tpu.core_type = #tpu.core_type<tc>, window_params = [{transform_indices = @transform_0, window_bounds = array<i64: 32, 64>}, {pipeline_mode = #tpu.pipeline_mode<synchronous>, transform_indices = @transform_1, window_bounds = array<i64: 64, 32>}, {pipeline_mode = #tpu.pipeline_mode<synchronous>, transform_indices = @transform_2, window_bounds = array<i64: 1, 32>}, {pipeline_mode = #tpu.pipeline_mode<synchronous>, transform_indices = @transform_3, window_bounds = array<i64: 32, 128>}, {pipeline_mode = #tpu.pipeline_mode<synchronous>, transform_indices = @transform_4, window_bounds = array<i64: 1, 128>}, {transform_indices = @transform_5, window_bounds = array<i64: 32, 128>}]} {
    %c0 = arith.constant 0 : index
    %c0_0 = arith.constant 0 : index
    %0 = vector.load %arg1[%c0, %c0_0] : memref<32x64xf32, #tpu.memory_space<vmem>>, vector<32x64xf32>
    %1 = arith.truncf %0 : vector<32x64xf32> to vector<32x64xbf16>
    %c0_1 = arith.constant 0 : index
    %c0_2 = arith.constant 0 : index
    %2 = vector.load %arg2[%c0_1, %c0_2] : memref<64x32xbf16, #tpu.memory_space<vmem>>, vector<64x32xbf16>
    %cst = arith.constant dense<0.000000e+00> : vector<32x32xf32>
    %3 = tpu.matmul %1, %2, %cst {dimension_numbers = #tpu.dot_dimension_numbers<[1], [0], [0], [1], [0, 0, 1, 1], [], []>} : vector<32x64xbf16>, vector<64x32xbf16>, vector<32x32xf32> -> vector<32x32xf32>
    %c0_3 = arith.constant 0 : index
    %c0_4 = arith.constant 0 : index
    %4 = vector.load %arg3[%c0_3, %c0_4] : memref<1x32xf32, #tpu.memory_space<vmem>>, vector<1x32xf32>
    %5 = vector.broadcast %4 : vector<1x32xf32> to vector<32x32xf32>
    %6 = arith.addf %3, %5 : vector<32x32xf32>
    %cst_5 = arith.constant 0.000000e+00 : f32
    %7 = vector.broadcast %cst_5 : f32 to vector<32x32xf32>
    %8 = arith.maximumf %6, %7 : vector<32x32xf32>
    %9 = arith.truncf %8 : vector<32x32xf32> to vector<32x32xbf16>
    %c0_6 = arith.constant 0 : index
    %c0_7 = arith.constant 0 : index
    %10 = vector.load %arg4[%c0_6, %c0_7] : memref<32x128xbf16, #tpu.memory_space<vmem>>, vector<32x128xbf16>
    %cst_8 = arith.constant dense<0.000000e+00> : vector<32x128xf32>
    %11 = tpu.matmul %9, %10, %cst_8 {dimension_numbers = #tpu.dot_dimension_numbers<[1], [0], [0], [1], [0, 0, 1, 1], [], []>} : vector<32x32xbf16>, vector<32x128xbf16>, vector<32x128xf32> -> vector<32x128xf32>
    %c0_9 = arith.constant 0 : index
    %c0_10 = arith.constant 0 : index
    %12 = vector.load %arg5[%c0_9, %c0_10] : memref<1x128xf32, #tpu.memory_space<vmem>>, vector<1x128xf32>
    %13 = vector.broadcast %12 : vector<1x128xf32> to vector<32x128xf32>
    %14 = arith.addf %11, %13 : vector<32x128xf32>
    %c0_11 = arith.constant 0 : index
    %c0_12 = arith.constant 0 : index
    %15 = vector.load %arg6[%c0_11, %c0_12] : memref<32x128xf32, #tpu.memory_space<vmem>>, vector<32x128xf32>
    tpu.vector_store %arg6[%c0_11, %c0_12], %14 {strides = array<i32>} : memref<32x128xf32, #tpu.memory_space<vmem>>, vector<32x128xf32>,
    return
  }
  func.func @transform_0(%arg0: i32) -> (i32, i32) {
    %c0_i32 = arith.constant 0 : i32
    %c0_i32_0 = arith.constant 0 : i32
    return %arg0, %c0_i32 : i32, i32
  }
  func.func @transform_1(%arg0: i32) -> (i32, i32) {
    %c0_i32 = arith.constant 0 : i32
    %c0_i32_0 = arith.constant 0 : i32
    %c0_i32_1 = arith.constant 0 : i32
    return %c0_i32, %c0_i32_0 : i32, i32
  }
  func.func @transform_2(%arg0: i32) -> (i32, i32) {
    %c0_i32 = arith.constant 0 : i32
    %c0_i32_0 = arith.constant 0 : i32
    %c0_i32_1 = arith.constant 0 : i32
    return %c0_i32, %c0_i32_0 : i32, i32
  }
  func.func @transform_3(%arg0: i32) -> (i32, i32) {
    %c0_i32 = arith.constant 0 : i32
    %c0_i32_0 = arith.constant 0 : i32
    %c0_i32_1 = arith.constant 0 : i32
    return %c0_i32, %c0_i32_0 : i32, i32
  }
  func.func @transform_4(%arg0: i32) -> (i32, i32) {
    %c0_i32 = arith.constant 0 : i32
    %c0_i32_0 = arith.constant 0 : i32
    %c0_i32_1 = arith.constant 0 : i32
    return %c0_i32, %c0_i32_0 : i32, i32
  }
  func.func @transform_5(%arg0: i32) -> (i32, i32) {
    %c0_i32 = arith.constant 0 : i32
    %c0_i32_0 = arith.constant 0 : i32
    return %arg0, %c0_i32 : i32, i32
  }
}

</mosaic_0001>

<bundles_post_ra>
// kernel: tpu_custom_call.1
= control target key start
LH: loop header
LB: loop body
LE: loop exit
PB: predicated region body
PF: predicated region fallthrough
CT: control target
= control target key end

     0   :  { %vm67_vm0 = vcmask 523264   ;;  %s373_s0 = inlined_call_operand.vmem [shape: f32[32,64], index: 0, kind: input, shape index: {}]   ;;  %s374_s1 = inlined_call_operand.vmem [shape: bf16[64,32], index: 1, kind: input, shape index: {}]   ;;  %s375_s2 = inlined_call_operand.vmem [shape: f32[1,32], index: 2, kind: input, shape index: {}]   ;;  %s376_s3 = inlined_call_operand.vmem [shape: bf16[32,128], index: 3, kind: input, shape index: {}]   ;;  %s377_s4 = inlined_call_operand.vmem [shape: f32[1,128], index: 4, kind: input, shape index: {}]   ;;  %s378_s5 = inlined_call_operand.hbm [shape: f32[32,128], index: 5, kind: output, shape index: {}]  }
   0x1   :  { %v273_v0 = vld [vmem:[%s374_s1 + $0x18] sm:$0xff]   ;;  %v274_v1 = vld [vmem:[%s374_s1 + $0x10] sm:$0xff]   ;;  %v275_v2 = vld [vmem:[%s374_s1 + $0x8] sm:$0xff]  }
   0x2   :  { %250 = vmatprep.subr.bf16.mxu0 %v273_v0  ;;  %v22_v3 = vld [vmem:[%s373_s0] sm:$0xff]  ;;  %v23_v4 = vld [vmem:[%s373_s0 + $0x8] sm:$0xff] }
   0x3   :  { %251 = vmatpush3.bf16.msra.mxu0 %v273_v0  ;;  %v26_v5 = vpack.c.bf16 %v23_v4, %v22_v3 }
   0x4   :  { %252 = vmatprep.subr.bf16.mxu0 %v274_v1 }
   0x5   :  { %10 = vsyncpa [#allocation3], 0  ;;  %258 = vmatprep.mubr.msk.bf16.mxu0 %vm67_vm0, %v26_v5  ;;  %v276_v6 = vld [vmem:[%s374_s1] sm:$0xff]   ;;  %v24_v7 = vld [vmem:[%s373_s0 + $0x10] sm:$0xff]  ;;  %vm152_vm1 = vcmask 261120  }
   0x6   :  { %v25_v8 = vld [vmem:[%s373_s0 + $0x18] sm:$0xff]  ;;  %v277_v10 = vld [vmem:[%s376_s3 + $0x8] sm:$0xff]   ;;  %v278_v11 = vld [vmem:[%s376_s3] sm:$0xff]  }
   0x7   :  { %253 = vmatpush3.bf16.msra.mxu0 %v274_v1  ;;  %v27_v9 = vpack.c.bf16 %v25_v8, %v24_v7  ;;  %262 = vmatprep.subr.bf16.mxu1 %v277_v10  ;;  %v228_v14 = vld [vmem:[%s375_s2] ss:$0 sm:$0xff]  ;;  %s301_s2 = smov [#allocation2]  }
   0x8   :  { %254 = vmatprep.subr.bf16.mxu0 %v275_v2  ;;  %263 = vmatpush3.bf16.msra.mxu1 %v277_v10  ;;  %v235_v27 = vld [vmem:[%s377_s4] ss:$0 sm:$0xff]  ;;  %s217_s14 = sshll.u32 %s301_s2, 4  ;;  %s218_s14 = int_to_ptr.vmem [resolvable:$true] %s217_s14 }
   0x9   :  { %264 = vmatprep.subr.bf16.mxu1 %v278_v11  ;;  %s279_s15 = scalar_lea.vmem %s218_s14, 512  ;;  %p284_p1 = scmp.lt.s32.totalorder %s218_s14, %s218_s14 }
   0xa   :  { %p280_p0 = scmp.ne.s32.totalorder %s218_s14, %s279_s15  ;;  %p285_p2 = scmp.lt.s32.totalorder %s279_s15, %s279_s15 }
   0xb   :  { %255 = vmatpush3.bf16.msra.mxu0 %v275_v2 }
   0xc   :  { %256 = vmatprep.subr.bf16.mxu0 %v276_v6  ;;  %265 = vmatpush3.bf16.msra.mxu1 %v278_v11  ;;  %p286_p3 = por %p285_p2, %p284_p1 }
   0xe   :  { %p287_p4 = pnand %p286_p3, %p280_p0 }
   0xf   :  { %257 = vmatpush3.bf16.msra.mxu0 %v276_v6 }
  0x12   :  { %259 = vmatmul.mubr.msk.bf16.vlgmr.msra.gmra.mxu0 %vm67_vm0, %v27_v9 }
  0xd2   :  { %v260_v12 = vpop.f32.mrf.mxu0 }
  0xd3   :  { %v117_v18 = vadd.f32 %v260_v12, %v228_v14 }
  0xd4   :  { %v108_v13 = vpop.f32.mrf.mxu0 }
  0xd5   :  { %v109_v16 = vadd.f32 %v228_v14, %v108_v13  ;;  %v125_v24 = vmax.f32 %v117_v18, 0.0 }
  0xd6   :  { %v261_v15 = vpop.f32.mrf.mxu0 }
  0xd7   :  { %v120_v17 = vadd.f32 %v261_v15, %v228_v14  ;;  %v123_v22 = vmax.f32 %v109_v16, 0.0 }
  0xd8   :  { %v111_v19 = vpop.f32.mrf.mxu0 }
  0xd9   :  { %v112_v20 = vadd.f32 %v228_v14, %v111_v19  ;;  %v126_v21 = vmax.f32 %v120_v17, 0.0 }
  0xdb   :  { %v124_v23 = vmax.f32 %v112_v20, 0.0  ;;  %v128_v26 = vpack.c.bf16 %v126_v21, %v125_v24 }
  0xdd   :  { %v127_v25 = vpack.c.bf16 %v124_v23, %v123_v22 }
  0xdf   :  { %266 = vmatprep.mubr.msk.bf16.mxu1 %vm152_vm1, %v127_v25 }
  0xe0   :  { %267 = vmatmul.mubr.msk.bf16.vlgmr.msra.gmra.mxu1 %vm152_vm1, %v128_v26 }
 0x1a0   :  { %v268_v28 = vpop.f32.mrf.mxu1 }
 0x1a1   :  { %v202_v29 = vadd.f32 %v268_v28, %v235_v27 }
 0x1a2   :  { %v193_v30 = vpop.f32.mrf.mxu1 }
 0x1a3   :  { %210 = vst [vmem:[#allocation2 + $0x10] sm:$0xff] %v202_v29  ;;  %v194_v31 = vadd.f32 %v235_v27, %v193_v30 }
 0x1a4   :  { %v269_v32 = vpop.f32.mrf.mxu1 }
 0x1a5   :  { %208 = vst [vmem:[#allocation2] sm:$0xff] %v194_v31  ;;  %v205_v33 = vadd.f32 %v269_v32, %v235_v27 }
 0x1a6   :  { %v196_v34 = vpop.f32.mrf.mxu1 }
 0x1a7   :  { %211 = vst [vmem:[#allocation2 + $0x18] sm:$0xff] %v205_v33  ;;  %v197_v35 = vadd.f32 %v235_v27, %v196_v34 }
 0x1a9   :  { %209 = vst [vmem:[#allocation2 + $0x8] sm:$0xff] %v197_v35 }
 0x1aa   :  { %290 = shalt.err (!%p287_p4)
}
 0x1ab   :  { %s302_s4 = smov 128   ;;  %s303_s16 = smov 8  }
 0x1ac   :  { %223 = dma.vmem_to_hbm [thread:$0]  %s218_s14, 512, %s378_s5, [#allocation3], %s302_s4, %s302_s4, %s303_s16  }
 0x1ad   :  { %299 = dma.done.wait [#allocation3], 512  }
 0x1ae   :  { %300 = vsyncadd [#allocation3], 4294966784 }
 0x1af   :  { %227 = vsyncpa [#allocation3], 1 }

</bundles_post_ra>
